<compile_context>
chip_gen: v6e
topology: v6e:2x2x1
jax: 0.10.0
libtpu: 0.0.40
codegen_flags: <defaults>
</compile_context>

<pallas_src>
import jax
import jax.numpy as jnp
from jax import lax
from jax.experimental import pallas as pl
from jax.experimental.pallas import tpu as pltpu


_LN_EPS = 1e-12


def bert_output_kernel(h_ref, res_ref, w_ref, b_ref, gamma_ref, beta_ref,
                       o_ref):
    # h_ref:     (TM, I)  intermediate activations tile (streamed, matmul dtype)
    # res_ref:   (TM, H)  residual input_tensor tile    (streamed)
    # w_ref:     (I, H)   dense weight, resident (constant index_map)
    # b_ref:     (1, H)   dense bias, f32, resident
    # gamma_ref: (1, H)   LayerNorm weight, f32, resident
    # beta_ref:  (1, H)   LayerNorm bias, f32, resident
    # o_ref:     (TM, H)  output tile

    # Dense: h @ W with native(-ly cast) operand dtype on the MXU, f32 acc.
    y = jnp.dot(h_ref[...], w_ref[...], preferred_element_type=jnp.float32)
    y = y + b_ref[...]                              # f32 bias add

    # Dropout is identity at inference time (module.eval()).
    # TODO(synk): training-mode dropout would need pltpu.prng_random_bits.

    # Residual add (f32 epilogue math).
    y = y + res_ref[...].astype(jnp.float32)

    # Single-pass LayerNorm statistics: row-sum and row-sum-of-squares are
    # independent (no reduce -> subtract -> reduce serial chain); divides are
    # replaced with a precomputed 1/H multiply; variance is clamped at zero to
    # guard against f32 cancellation in E[y^2] - E[y]^2.
    inv_h = 1.0 / y.shape[-1]
    row_sum = jnp.sum(y, axis=-1, keepdims=True)
    row_sumsq = jnp.sum(y * y, axis=-1, keepdims=True)
    u = row_sum * inv_h
    var = jnp.maximum(row_sumsq * inv_h - u * u, 0.0)
    rstd = lax.rsqrt(var + _LN_EPS)                 # rsqrt -> EUP slot

    # Folded scale/bias: out = y * (gamma*rstd) + (beta - u*gamma*rstd).
    scale = gamma_ref[...] * rstd
    shift = beta_ref[...] - u * scale
    o_ref[...] = (y * scale + shift).astype(o_ref.dtype)


def _vmem_capacity_bytes():
    """Physical VMEM per TensorCore; conservative 64 MiB (v7x) if unknown."""
    try:
        info = pltpu.get_tpu_info()
        cap = getattr(info, "vmem_capacity_bytes", None)
        if cap:
            return int(cap)
    except Exception:
        pass
    return 64 * 1024 * 1024


def _working_set_bytes(tm, I, H, op_bytes, res_bytes, out_bytes):
    resident = I * H * op_bytes + 3 * H * 4                     # weight (x1) + params
    streamed = 2 * tm * (I * op_bytes + H * res_bytes + H * out_bytes)  # double-buffered
    temps = 4 * tm * H * 4                                      # f32 y/scale/shift/scratch
    return resident + streamed + temps


def _pick_tm(T, I, H, op_bytes, res_bytes, out_bytes, budget):
    if T <= 128:
        return T
    for cand in (1024, 512, 256, 128):
        if _working_set_bytes(cand, I, H, op_bytes, res_bytes, out_bytes) <= budget:
            return min(cand, T)
    return 128


def bert_output(hidden_states, input_tensor, w_t, b, gamma, beta, *,
                tm=None, matmul_dtype=jnp.bfloat16):
    """hidden_states: (B, S, I), input_tensor: (B, S, H)
       w_t: (I, H) (torch Linear weight, transposed), b/gamma/beta: (H,)

    matmul_dtype: dtype fed to the MXU for hidden_states @ w_t (default bf16,
    the fast path on every TPU generation; accumulation + LN epilogue stay f32).
    Pass jnp.float32 for exact-f32 matmul math, or None to keep input dtype."""
    B, S, I = hidden_states.shape
    H = input_tensor.shape[-1]
    T = B * S
    out_dtype = input_tensor.dtype

    if matmul_dtype is None:
        matmul_dtype = hidden_states.dtype

    h2 = hidden_states.reshape(T, I).astype(matmul_dtype)
    w2 = w_t.astype(matmul_dtype)
    r2 = input_tensor.reshape(T, H)
    # Cast small params to f32 once here (not per grid step inside the kernel).
    b2 = b.reshape(1, H).astype(jnp.float32)
    g2 = gamma.reshape(1, H).astype(jnp.float32)
    be2 = beta.reshape(1, H).astype(jnp.float32)

    op_bytes = jnp.dtype(matmul_dtype).itemsize
    res_bytes = jnp.dtype(r2.dtype).itemsize
    out_bytes = jnp.dtype(out_dtype).itemsize

    capacity = _vmem_capacity_bytes()
    budget = int(0.75 * capacity)
    if tm is None:
        # Generation-aware token tile: 1024 on 128 MiB-VMEM chips (v5e/v6e),
        # 512 (bf16) / 256 (f32) on v7x's 64 MiB per-TC VMEM.
        tm = _pick_tm(T, I, H, op_bytes, res_bytes, out_bytes, budget)
    grid_t = pl.cdiv(T, tm)

    vmem_limit = int(min(
        capacity,
        max(_working_set_bytes(min(tm, T), I, H, op_bytes, res_bytes, out_bytes)
            + (8 << 20), 32 << 20)))

    cost = pl.CostEstimate(
        flops=2 * T * I * H,
        transcendentals=T,                       # one rsqrt per token row
        bytes_accessed=(T * I * op_bytes         # hidden_states
                        + I * H * op_bytes       # weight (read once)
                        + T * H * res_bytes      # residual
                        + 3 * H * 4              # bias/gamma/beta (f32)
                        + T * H * out_bytes),    # output
    )

    def make_call(single_buffer_residents):
        res_kw = ({"pipeline_mode": pl.Buffered(1)}
                  if single_buffer_residents else {})
        return pl.pallas_call(
            bert_output_kernel,
            out_shape=jax.ShapeDtypeStruct((T, H), out_dtype),
            grid_spec=pltpu.PrefetchScalarGridSpec(
                num_scalar_prefetch=0,
                grid=(grid_t,),
                in_specs=[
                    pl.BlockSpec((tm, I), lambda i: (i, 0)),            # h tile
                    pl.BlockSpec((tm, H), lambda i: (i, 0)),            # residual
                    pl.BlockSpec((I, H), lambda i: (0, 0), **res_kw),   # weight
                    pl.BlockSpec((1, H), lambda i: (0, 0), **res_kw),   # bias
                    pl.BlockSpec((1, H), lambda i: (0, 0), **res_kw),   # LN gamma
                    pl.BlockSpec((1, H), lambda i: (0, 0), **res_kw),   # LN beta
                ],
                out_specs=pl.BlockSpec((tm, H), lambda i: (i, 0)),
            ),
            compiler_params=pltpu.CompilerParams(
                # Token tiles are independent -> shard across v7x's 2 TCs.
                dimension_semantics=("parallel",),
                vmem_limit_bytes=vmem_limit),
            cost_estimate=cost,
        )

    # TODO(synk): for f32 operands with very large I on 64 MiB-VMEM chips, add a
    # K(=I) grid axis with an f32 accumulator scratch instead of shrinking tm.
    try:
        out2 = make_call(True)(h2, r2, w2, b2, g2, be2)
    except Exception:
        # pipeline_mode=pl.Buffered(1) not accepted on this jax version: fall
        # back to default double-buffered resident operands (costs VMEM only).
        out2 = make_call(False)(h2, r2, w2, b2, g2, be2)

    return out2.reshape(B, S, H)


def reference(hidden_states, input_tensor, w_t, b, gamma, beta, eps=1e-12):
    y = jnp.einsum("bsi,ih->bsh", hidden_states, w_t) + b
    y = y + input_tensor
    u = jnp.mean(y, axis=-1, keepdims=True)
    s = jnp.mean((y - u) ** 2, axis=-1, keepdims=True)
    yn = (y - u) / jnp.sqrt(s + eps)
    return gamma * yn + beta


if __name__ == "__main__":
    # Small config: batch=2, seq=16, hidden=32, intermediate=64
    B, S, H, I = 2, 16, 32, 64

    key = jax.random.PRNGKey(0)
    k1, k2, k3, k4 = jax.random.split(key, 4)

    hidden_states = jax.random.normal(k1, (B, S, I), dtype=jnp.float32)
    input_tensor = jax.random.normal(k2, (B, S, H), dtype=jnp.float32)

    # Deterministic parameter init (torch Linear would be (H, I); we pass W^T).
    w_t = jax.random.normal(k3, (I, H), dtype=jnp.float32) * 0.02
    bias = jax.random.normal(k4, (H,), dtype=jnp.float32) * 0.02
    gamma = jnp.ones((H,), dtype=jnp.float32)   # BertLayerNorm.weight
    beta = jnp.zeros((H,), dtype=jnp.float32)   # BertLayerNorm.bias

    ref = reference(hidden_states, input_tensor, w_t, bias, gamma, beta)

    # Exact-math path (f32 MXU operands): tight tolerance vs the f32 reference.
    # tm=16 -> grid=(2,) so the token-tiled pipeline is exercised even at this
    # tiny shape (default tm picks the generation-aware size at real shapes).
    out_f32 = bert_output(hidden_states, input_tensor, w_t, bias, gamma, beta,
                          tm=16, matmul_dtype=jnp.float32)
    out_f32 = jax.block_until_ready(out_f32)
    assert out_f32.shape == (B, S, H)
    assert jnp.allclose(out_f32, ref, atol=1e-4, rtol=1e-4), "f32 path mismatch"

    # Default fast path: bf16 MXU operands, f32 accumulation + f32 LN epilogue.
    out_fast = bert_output(hidden_states, input_tensor, w_t, bias, gamma, beta,
                           tm=16)
    out_fast = jax.block_until_ready(out_fast)
    assert out_fast.shape == (B, S, H)
    assert jnp.allclose(out_fast, ref, atol=3e-2, rtol=3e-2), "bf16 path mismatch"

    print("KERNEL_OK")
</pallas_src>

<mosaic_0001>
module attributes {stable_mosaic.version = 11 : i64} {
  func.func @bert_output_kernel(%arg0: i32, %arg1: memref<16x64xf32, #tpu.memory_space<vmem>>, %arg2: memref<16x32xf32, #tpu.memory_space<vmem>>, %arg3: memref<64x32xf32, #tpu.memory_space<vmem>>, %arg4: memref<1x32xf32, #tpu.memory_space<vmem>>, %arg5: memref<1x32xf32, #tpu.memory_space<vmem>>, %arg6: memref<1x32xf32, #tpu.memory_space<vmem>>, %arg7: memref<16x32xf32, #tpu.memory_space<vmem>>) attributes {dimension_semantics = [#tpu.dimension_semantics<parallel>], iteration_bounds = array<i64: 2>, scalar_prefetch = 0 : i64, scratch_operands = 0 : i64, tpu.core_type = #tpu.core_type<tc>, window_params = [{transform_indices = @transform_0, window_bounds = array<i64: 16, 64>}, {transform_indices = @transform_1, window_bounds = array<i64: 16, 32>}, {pipeline_mode = #tpu.pipeline_mode<synchronous>, transform_indices = @transform_2, window_bounds = array<i64: 64, 32>}, {pipeline_mode = #tpu.pipeline_mode<synchronous>, transform_indices = @transform_3, window_bounds = array<i64: 1, 32>}, {pipeline_mode = #tpu.pipeline_mode<synchronous>, transform_indices = @transform_4, window_bounds = array<i64: 1, 32>}, {pipeline_mode = #tpu.pipeline_mode<synchronous>, transform_indices = @transform_5, window_bounds = array<i64: 1, 32>}, {transform_indices = @transform_6, window_bounds = array<i64: 16, 32>}]} {
    %c0 = arith.constant 0 : index
    %c0_0 = arith.constant 0 : index
    %0 = vector.load %arg1[%c0, %c0_0] : memref<16x64xf32, #tpu.memory_space<vmem>>, vector<16x64xf32>
    %c0_1 = arith.constant 0 : index
    %c0_2 = arith.constant 0 : index
    %1 = vector.load %arg3[%c0_1, %c0_2] : memref<64x32xf32, #tpu.memory_space<vmem>>, vector<64x32xf32>
    %cst = arith.constant dense<0.000000e+00> : vector<16x32xf32>
    %2 = tpu.matmul %0, %1, %cst {dimension_numbers = #tpu.dot_dimension_numbers<[1], [0], [0], [1], [0, 0, 1, 1], [], []>} : vector<16x64xf32>, vector<64x32xf32>, vector<16x32xf32> -> vector<16x32xf32>
    %c0_3 = arith.constant 0 : index
    %c0_4 = arith.constant 0 : index
    %3 = vector.load %arg4[%c0_3, %c0_4] : memref<1x32xf32, #tpu.memory_space<vmem>>, vector<1x32xf32>
    %4 = vector.broadcast %3 : vector<1x32xf32> to vector<16x32xf32>
    %5 = arith.addf %2, %4 : vector<16x32xf32>
    %c0_5 = arith.constant 0 : index
    %c0_6 = arith.constant 0 : index
    %6 = vector.load %arg2[%c0_5, %c0_6] : memref<16x32xf32, #tpu.memory_space<vmem>>, vector<16x32xf32>
    %7 = arith.addf %5, %6 : vector<16x32xf32>
    %cst_7 = arith.constant dense<0.000000e+00> : vector<16xf32>
    %8 = vector.multi_reduction <add>, %7, %cst_7 [1] : vector<16x32xf32> to vector<16xf32>
    %9 = vector.shape_cast %8 : vector<16xf32> to vector<16x1xf32>
    %10 = arith.mulf %7, %7 : vector<16x32xf32>
    %cst_8 = arith.constant dense<0.000000e+00> : vector<16xf32>
    %11 = vector.multi_reduction <add>, %10, %cst_8 [1] : vector<16x32xf32> to vector<16xf32>
    %12 = vector.shape_cast %11 : vector<16xf32> to vector<16x1xf32>
    %cst_9 = arith.constant 3.125000e-02 : f32
    %13 = vector.broadcast %cst_9 : f32 to vector<16x1xf32>
    %14 = arith.mulf %9, %13 : vector<16x1xf32>
    %cst_10 = arith.constant 3.125000e-02 : f32
    %15 = vector.broadcast %cst_10 : f32 to vector<16x1xf32>
    %16 = arith.mulf %12, %15 : vector<16x1xf32>
    %17 = arith.mulf %14, %14 : vector<16x1xf32>
    %18 = arith.subf %16, %17 : vector<16x1xf32>
    %cst_11 = arith.constant 0.000000e+00 : f32
    %19 = vector.broadcast %cst_11 : f32 to vector<16x1xf32>
    %20 = arith.maximumf %18, %19 : vector<16x1xf32>
    %cst_12 = arith.constant 9.99999996E-13 : f32
    %21 = vector.broadcast %cst_12 : f32 to vector<16x1xf32>
    %22 = arith.addf %20, %21 : vector<16x1xf32>
    %23 = math.rsqrt %22 : vector<16x1xf32>
    %c0_13 = arith.constant 0 : index
    %c0_14 = arith.constant 0 : index
    %24 = vector.load %arg5[%c0_13, %c0_14] : memref<1x32xf32, #tpu.memory_space<vmem>>, vector<1x32xf32>
    %25 = vector.broadcast %24 : vector<1x32xf32> to vector<16x32xf32>
    %26 = vector.broadcast %23 : vector<16x1xf32> to vector<16x32xf32>
    %27 = arith.mulf %25, %26 : vector<16x32xf32>
    %c0_15 = arith.constant 0 : index
    %c0_16 = arith.constant 0 : index
    %28 = vector.load %arg6[%c0_15, %c0_16] : memref<1x32xf32, #tpu.memory_space<vmem>>, vector<1x32xf32>
    %29 = vector.broadcast %14 : vector<16x1xf32> to vector<16x32xf32>
    %30 = arith.mulf %29, %27 : vector<16x32xf32>
    %31 = vector.broadcast %28 : vector<1x32xf32> to vector<16x32xf32>
    %32 = arith.subf %31, %30 : vector<16x32xf32>
    %33 = arith.mulf %7, %27 : vector<16x32xf32>
    %34 = arith.addf %33, %32 : vector<16x32xf32>
    %c0_17 = arith.constant 0 : index
    %c0_18 = arith.constant 0 : index
    %35 = vector.load %arg7[%c0_17, %c0_18] : memref<16x32xf32, #tpu.memory_space<vmem>>, vector<16x32xf32>
    tpu.vector_store %arg7[%c0_17, %c0_18], %34 {strides = array<i32>} : memref<16x32xf32, #tpu.memory_space<vmem>>, vector<16x32xf32>,
    return
  }
  func.func @transform_0(%arg0: i32) -> (i32, i32) {
    %c0_i32 = arith.constant 0 : i32
    %c0_i32_0 = arith.constant 0 : i32
    return %arg0, %c0_i32 : i32, i32
  }
  func.func @transform_1(%arg0: i32) -> (i32, i32) {
    %c0_i32 = arith.constant 0 : i32
    %c0_i32_0 = arith.constant 0 : i32
    return %arg0, %c0_i32 : i32, i32
  }
  func.func @transform_2(%arg0: i32) -> (i32, i32) {
    %c0_i32 = arith.constant 0 : i32
    %c0_i32_0 = arith.constant 0 : i32
    %c0_i32_1 = arith.constant 0 : i32
    return %c0_i32, %c0_i32_0 : i32, i32
  }
  func.func @transform_3(%arg0: i32) -> (i32, i32) {
    %c0_i32 = arith.constant 0 : i32
    %c0_i32_0 = arith.constant 0 : i32
    %c0_i32_1 = arith.constant 0 : i32
    return %c0_i32, %c0_i32_0 : i32, i32
  }
  func.func @transform_4(%arg0: i32) -> (i32, i32) {
    %c0_i32 = arith.constant 0 : i32
    %c0_i32_0 = arith.constant 0 : i32
    %c0_i32_1 = arith.constant 0 : i32
    return %c0_i32, %c0_i32_0 : i32, i32
  }
  func.func @transform_5(%arg0: i32) -> (i32, i32) {
    %c0_i32 = arith.constant 0 : i32
    %c0_i32_0 = arith.constant 0 : i32
    %c0_i32_1 = arith.constant 0 : i32
    return %c0_i32, %c0_i32_0 : i32, i32
  }
  func.func @transform_6(%arg0: i32) -> (i32, i32) {
    %c0_i32 = arith.constant 0 : i32
    %c0_i32_0 = arith.constant 0 : i32
    return %arg0, %c0_i32 : i32, i32
  }
}

module attributes {stable_mosaic.version = 11 : i64} {
  func.func @bert_output_kernel(%arg0: i32, %arg1: memref<16x64xf32, #tpu.memory_space<vmem>>, %arg2: memref<16x32xf32, #tpu.memory_space<vmem>>, %arg3: memref<64x32xf32, #tpu.memory_space<vmem>>, %arg4: memref<1x32xf32, #tpu.memory_space<vmem>>, %arg5: memref<1x32xf32, #tpu.memory_space<vmem>>, %arg6: memref<1x32xf32, #tpu.memory_space<vmem>>, %arg7: memref<16x32xf32, #tpu.memory_space<vmem>>) attributes {dimension_semantics = [#tpu.dimension_semantics<parallel>], iteration_bounds = array<i64: 2>, scalar_prefetch = 0 : i64, scratch_operands = 0 : i64, tpu.core_type = #tpu.core_type<tc>, window_params = [{transform_indices = @transform_0, window_bounds = array<i64: 16, 64>}, {transform_indices = @transform_1, window_bounds = array<i64: 16, 32>}, {pipeline_mode = #tpu.pipeline_mode<synchronous>, transform_indices = @transform_2, window_bounds = array<i64: 64, 32>}, {pipeline_mode = #tpu.pipeline_mode<synchronous>, transform_indices = @transform_3, window_bounds = array<i64: 1, 32>}, {pipeline_mode = #tpu.pipeline_mode<synchronous>, transform_indices = @transform_4, window_bounds = array<i64: 1, 32>}, {pipeline_mode = #tpu.pipeline_mode<synchronous>, transform_indices = @transform_5, window_bounds = array<i64: 1, 32>}, {transform_indices = @transform_6, window_bounds = array<i64: 16, 32>}]} {
    %c0 = arith.constant 0 : index
    %c0_0 = arith.constant 0 : index
    %0 = vector.load %arg1[%c0, %c0_0] : memref<16x64xf32, #tpu.memory_space<vmem>>, vector<16x64xf32>
    %c0_1 = arith.constant 0 : index
    %c0_2 = arith.constant 0 : index
    %1 = vector.load %arg3[%c0_1, %c0_2] : memref<64x32xf32, #tpu.memory_space<vmem>>, vector<64x32xf32>
    %cst = arith.constant dense<0.000000e+00> : vector<16x32xf32>
    %2 = tpu.matmul %0, %1, %cst {dimension_numbers = #tpu.dot_dimension_numbers<[1], [0], [0], [1], [0, 0, 1, 1], [], []>} : vector<16x64xf32>, vector<64x32xf32>, vector<16x32xf32> -> vector<16x32xf32>
    %c0_3 = arith.constant 0 : index
    %c0_4 = arith.constant 0 : index
    %3 = vector.load %arg4[%c0_3, %c0_4] : memref<1x32xf32, #tpu.memory_space<vmem>>, vector<1x32xf32>
    %4 = vector.broadcast %3 : vector<1x32xf32> to vector<16x32xf32>
    %5 = arith.addf %2, %4 : vector<16x32xf32>
    %c0_5 = arith.constant 0 : index
    %c0_6 = arith.constant 0 : index
    %6 = vector.load %arg2[%c0_5, %c0_6] : memref<16x32xf32, #tpu.memory_space<vmem>>, vector<16x32xf32>
    %7 = arith.addf %5, %6 : vector<16x32xf32>
    %cst_7 = arith.constant dense<0.000000e+00> : vector<16xf32>
    %8 = vector.multi_reduction <add>, %7, %cst_7 [1] : vector<16x32xf32> to vector<16xf32>
    %9 = vector.shape_cast %8 : vector<16xf32> to vector<16x1xf32>
    %10 = arith.mulf %7, %7 : vector<16x32xf32>
    %cst_8 = arith.constant dense<0.000000e+00> : vector<16xf32>
    %11 = vector.multi_reduction <add>, %10, %cst_8 [1] : vector<16x32xf32> to vector<16xf32>
    %12 = vector.shape_cast %11 : vector<16xf32> to vector<16x1xf32>
    %cst_9 = arith.constant 3.125000e-02 : f32
    %13 = vector.broadcast %cst_9 : f32 to vector<16x1xf32>
    %14 = arith.mulf %9, %13 : vector<16x1xf32>
    %cst_10 = arith.constant 3.125000e-02 : f32
    %15 = vector.broadcast %cst_10 : f32 to vector<16x1xf32>
    %16 = arith.mulf %12, %15 : vector<16x1xf32>
    %17 = arith.mulf %14, %14 : vector<16x1xf32>
    %18 = arith.subf %16, %17 : vector<16x1xf32>
    %cst_11 = arith.constant 0.000000e+00 : f32
    %19 = vector.broadcast %cst_11 : f32 to vector<16x1xf32>
    %20 = arith.maximumf %18, %19 : vector<16x1xf32>
    %cst_12 = arith.constant 9.99999996E-13 : f32
    %21 = vector.broadcast %cst_12 : f32 to vector<16x1xf32>
    %22 = arith.addf %20, %21 : vector<16x1xf32>
    %23 = math.rsqrt %22 : vector<16x1xf32>
    %c0_13 = arith.constant 0 : index
    %c0_14 = arith.constant 0 : index
    %24 = vector.load %arg5[%c0_13, %c0_14] : memref<1x32xf32, #tpu.memory_space<vmem>>, vector<1x32xf32>
    %25 = vector.broadcast %24 : vector<1x32xf32> to vector<16x32xf32>
    %26 = vector.broadcast %23 : vector<16x1xf32> to vector<16x32xf32>
    %27 = arith.mulf %25, %26 : vector<16x32xf32>
    %c0_15 = arith.constant 0 : index
    %c0_16 = arith.constant 0 : index
    %28 = vector.load %arg6[%c0_15, %c0_16] : memref<1x32xf32, #tpu.memory_space<vmem>>, vector<1x32xf32>
    %29 = vector.broadcast %14 : vector<16x1xf32> to vector<16x32xf32>
    %30 = arith.mulf %29, %27 : vector<16x32xf32>
    %31 = vector.broadcast %28 : vector<1x32xf32> to vector<16x32xf32>
    %32 = arith.subf %31, %30 : vector<16x32xf32>
    %33 = arith.mulf %7, %27 : vector<16x32xf32>
    %34 = arith.addf %33, %32 : vector<16x32xf32>
    %c0_17 = arith.constant 0 : index
    %c0_18 = arith.constant 0 : index
    %35 = vector.load %arg7[%c0_17, %c0_18] : memref<16x32xf32, #tpu.memory_space<vmem>>, vector<16x32xf32>
    tpu.vector_store %arg7[%c0_17, %c0_18], %34 {strides = array<i32>} : memref<16x32xf32, #tpu.memory_space<vmem>>, vector<16x32xf32>,
    return
  }
  func.func @transform_0(%arg0: i32) -> (i32, i32) {
    %c0_i32 = arith.constant 0 : i32
    %c0_i32_0 = arith.constant 0 : i32
    return %arg0, %c0_i32 : i32, i32
  }
  func.func @transform_1(%arg0: i32) -> (i32, i32) {
    %c0_i32 = arith.constant 0 : i32
    %c0_i32_0 = arith.constant 0 : i32
    return %arg0, %c0_i32 : i32, i32
  }
  func.func @transform_2(%arg0: i32) -> (i32, i32) {
    %c0_i32 = arith.constant 0 : i32
    %c0_i32_0 = arith.constant 0 : i32
    %c0_i32_1 = arith.constant 0 : i32
    return %c0_i32, %c0_i32_0 : i32, i32
  }
  func.func @transform_3(%arg0: i32) -> (i32, i32) {
    %c0_i32 = arith.constant 0 : i32
    %c0_i32_0 = arith.constant 0 : i32
    %c0_i32_1 = arith.constant 0 : i32
    return %c0_i32, %c0_i32_0 : i32, i32
  }
  func.func @transform_4(%arg0: i32) -> (i32, i32) {
    %c0_i32 = arith.constant 0 : i32
    %c0_i32_0 = arith.constant 0 : i32
    %c0_i32_1 = arith.constant 0 : i32
    return %c0_i32, %c0_i32_0 : i32, i32
  }
  func.func @transform_5(%arg0: i32) -> (i32, i32) {
    %c0_i32 = arith.constant 0 : i32
    %c0_i32_0 = arith.constant 0 : i32
    %c0_i32_1 = arith.constant 0 : i32
    return %c0_i32, %c0_i32_0 : i32, i32
  }
  func.func @transform_6(%arg0: i32) -> (i32, i32) {
    %c0_i32 = arith.constant 0 : i32
    %c0_i32_0 = arith.constant 0 : i32
    return %arg0, %c0_i32 : i32, i32
  }
}

</mosaic_0001>

<bundles_post_ra>
// kernel: tpu_custom_call.1
= control target key start
LH: loop header
LB: loop body
LE: loop exit
PB: predicated region body
PF: predicated region fallthrough
CT: control target
= control target key end

     0   :  { %11 = vsyncpa [#allocation3], 0  ;;  %s860_s0 = inlined_call_operand.vmem [shape: f32[32,64], index: 0, kind: input, shape index: {}]   ;;  %s861_s1 = inlined_call_operand.vmem [shape: f32[32,32], index: 1, kind: input, shape index: {}]   ;;  %s862_s2 = inlined_call_operand.vmem [shape: f32[64,32], index: 2, kind: input, shape index: {}]   ;;  %s863_s3 = inlined_call_operand.vmem [shape: f32[1,32], index: 3, kind: input, shape index: {}]   ;;  %s864_s4 = inlined_call_operand.vmem [shape: f32[1,32], index: 4, kind: input, shape index: {}]   ;;  %s865_s5 = inlined_call_operand.vmem [shape: f32[1,32], index: 5, kind: input, shape index: {}]   ;;  %s866_s6 = inlined_call_operand.hbm [shape: f32[32,32], index: 6, kind: output, shape index: {}]  }
   0x1   :  { %13 = vsyncpa [#allocation3 + $0x1], 0  ;;  %s715_s21 = smov 0   ;;  %s717_s22 = smov 0  }
   0x2   :  { %s719_s23 = smov 0   ;;  %s721_s24 = smov 0  }
   0x3 LB: > { %s736_s25 = sadd.s32 4294967295, %s675_s24   ;;  %s521_s26 = sadd.s32 4294967294, %s675_s24   ;;  %s675_s24 = sphi %s721_s24, %s872_s24   ;;  %s671_s23 = sphi %s719_s23, %s871_s23   ;;  %s667_s22 = sphi %s717_s22, %s870_s22   ;;  %s663_s21 = sphi %s715_s21, %s869_s21  }
   0x4   : > { %s740_s27 = sadd.s32 1, %s675_s24   ;;  %s162_s28 = sadd.s32 1, %s671_s23 }
   0x5   : > { %s159_s29 = ssub.s32 %s675_s24, %s740_s27  ;;  %p172_p0 = scmp.ne.s32.totalorder %s671_s23, %s667_s22 }
   0x6   : > { %p160_p1 = scmp.eq.s32.totalorder %s159_s29, 0  ;;  %p173_p2 = scmp.eq.s32.totalorder %s736_s25, 1 }
   0x7   : > { %p178_p3 = scmp.ne.s32.totalorder %s667_s22, %s663_s21  ;;  %p179_p4 = scmp.eq.s32.totalorder %s521_s26, 1 }
   0x8   : > { %s751_s30 = scalar_select %p160_p1, %s671_s23, %s162_s28  }
   0x9   : > { %p753_p5 = por %p173_p2, %p172_p0  ;;  %p757_p6 = por %p179_p4, %p178_p3 }
   0xa   : > { %p524_p7 = scmp.ge.s32.totalorder %s675_s24, 1  ;;  %p227_p8 = scmp.lt.s32.totalorder %s675_s24, 3 }
   0xc   : > { %p228_p9 = pnand %p524_p7, %p227_p8 }
   0xd   : > { %s526_s13 = sshll.u32 (!%p228_p9), %s736_s25, 1  ;;  %s259_s28 = sand.u32 (!%p228_p9), 1, %s667_s22  }
   0xe   : > { %231 = sbr.rel (%p228_p9) target bundleno = 424 (0x1a8), region = 44  ;;  %p263_p10 = scmp.lt.s32.totalorder (!%p228_p9), %s526_s13, 3 }
   0xf   : > { %s525_s10 = sshll.u32 (!%p228_p9), %s259_s28, 4  ;;  %s540_s11 = sshll.u32 (!%p228_p9), %s736_s25, 8 }
  0x10   : > { %s261_s12 = scalar_lea.vmem (!%p228_p9), [#allocation2], %s525_s10  ;;  %s815_s16 = scalar_lea.hbm (!%p228_p9), %s866_s6, %s540_s11 }
  0x11   : > { %s820_s25 = scalar_lea.sflag (!%p228_p9), [#allocation3], %s259_s28  ;;  %s677_s19 = smov (!%p228_p9), [#allocation2]  }
  0x13   : > { %v284_v0 = vld [vmem:[%s862_s2 + $0x38] sm:$0xff]  ;;  %v283_v1 = vld [vmem:[%s862_s2 + $0x30] sm:$0xff]  ;;  %v282_v2 = vld [vmem:[%s862_s2 + $0x28] sm:$0xff]  ;;  %s874_s13 = smov (!%p263_p10, %s526_s13), 3  ;;  %vm292_vm0 = vcmask 523264   ;;  %vm378_vm1 = vcmask 261120  }
  0x14   : > { %551 = vmatprep.subr.mxu0 %v284_v0  ;;  %v281_v3 = vld [vmem:[%s862_s2 + $0x20] sm:$0xff]  ;;  %s527_s18 = sshll.u32 %s874_s13, 3  ;;  %v280_v4 = vld [vmem:[%s862_s2 + $0x18] sm:$0xff]  ;;  %v279_v6 = vld [vmem:[%s862_s2 + $0x10] sm:$0xff]  ;;  %s447_s13 = sshll.u32 %s261_s12, 4  ;;  %s817_s13 = int_to_ptr.vmem [resolvable:$true] %s447_s13 }
  0x15   : > { %552 = vmatpush3.msra.mxu0 %v284_v0  ;;  %s266_s29 = scalar_lea.vmem %s860_s0, %s527_s18  ;;  %v278_v7 = vld [vmem:[%s862_s2 + $0x8] sm:$0xff]  ;;  %v277_v8 = vld [vmem:[%s862_s2] sm:$0xff]  ;;  %s272_s20 = scalar_lea.vmem %s861_s1, %s527_s18 }
  0x16   : > { %553 = vmatprep.subr.mxu0 %v283_v1  ;;  %v275_v5 = vld [vmem:[%s266_s29] sm:$0xff]  ;;  %v276_v9 = vld [vmem:[%s266_s29 + $0x8] sm:$0xff]  ;;  %s615_s17 = scalar_lea.vmem %s817_s13, 256 }
  0x17   : > { %554 = vmatpush3.msra.mxu0 %v283_v1  ;;  %567 = vmatprep.mubr.msk.f32.mxu0 %vm292_vm0, %v275_v5  ;;  %v530_v10 = vld [vmem:[%s863_s3] ss:$0 sm:$0xff]  ;;  %v375_v13 = vld [vmem:[%s272_s20 + $0x8] sm:$0xff]  ;;  %p616_p11 = scmp.ne.s32.totalorder %s817_s13, %s615_s17 }
  0x18   : > { %555 = vmatprep.subr.mxu0 %v282_v2  ;;  %v374_v15 = vld [vmem:[%s272_s20] sm:$0xff]  ;;  %s619_s20 = sshll.u32 %s677_s19, 4  ;;  %s620_s20 = int_to_ptr.vmem [resolvable:$false] %s619_s20 }
  0x19   : > { %556 = vmatpush3.msra.mxu0 %v282_v2  ;;  %v533_v41 = vld [vmem:[%s864_s4] ss:$0 sm:$0xff]  ;;  %p617_p12 = pnand %p616_p11, %p753_p5  ;;  %s621_s18 = scalar_lea.vmem %s620_s20, 512 }
  0x1a   : > { %557 = vmatprep.subr.mxu0 %v281_v3  ;;  %v534_v44 = vld [vmem:[%s865_s5] ss:$0 sm:$0xff]  ;;  %p622_p0 = scmp.lt.s32.totalorder %s817_s13, %s620_s20  ;;  %p623_p1 = scmp.lt.s32.totalorder %s621_s18, %s615_s17 }
  0x1b   : > { %558 = vmatpush3.msra.mxu0 %v281_v3  ;;  %p618_p13 = pneg %p617_p12 }
  0x1c   : > { %559 = vmatprep.subr.mxu0 %v280_v4  ;;  %p624_p2 = por %p623_p1, %p622_p0 }
  0x1d   : > { %560 = vmatpush3.msra.mxu0 %v280_v4 }
  0x1e   : > { %561 = vmatprep.subr.mxu0 %v279_v6  ;;  %p625_p3 = pnand %p624_p2, %p618_p13 }
  0x1f   : > { %562 = vmatpush3.msra.mxu0 %v279_v6 }
  0x20   : > { %563 = vmatprep.subr.mxu0 %v278_v7 }
  0x21   : > { %564 = vmatpush3.msra.mxu0 %v278_v7 }
  0x22   : > { %565 = vmatprep.subr.mxu0 %v277_v8 }
  0x23   : > { %566 = vmatpush3.msra.mxu0 %v277_v8 }
  0x24   : > { %568 = vmatmul.mubr.msk.f32.vlgmr.msra.gmra.mxu0 %vm292_vm0, %v276_v9 }
  0xe4   : > { %v569_v11 = vpop.f32.mrf.mxu0 }
  0xe5   : > { %v371_v12 = vadd.f32 %v569_v11, %v530_v10 }
  0xe6   : > { %v365_v14 = vpop.f32.mrf.mxu0 }
  0xe7   : > { %v366_v16 = vadd.f32 %v530_v10, %v365_v14  ;;  %v377_v17 = vadd.f32 %v375_v13, %v371_v12 }
  0xe9   : > { %v376_v18 = vadd.f32 %v374_v15, %v366_v16  ;;  %v386_v22 = vmul.f32 %v377_v17, %v377_v17  ;;  %v382_v23 = vsel %vm378_vm1, %v377_v17, 0.0 }
  0xeb   : > { %v379_v19 = vsel %vm378_vm1, %v376_v18, 0.0  ;;  %v385_v20 = vmul.f32 %v376_v18, %v376_v18  ;;  %v390_v24 = vsel %vm378_vm1, %v386_v22, 0.0 }
  0xec   : > { %380 = vadd.xlane.f32.xlu0 %v379_v19 }
  0xed   : > { %v387_v21 = vsel %vm378_vm1, %v385_v20, 0.0 }
  0xee   : > { %388 = vadd.xlane.f32.xlu1 %v387_v21 }
  0xf0   : > { %383 = vadd.xlane.f32.xlu0 %v382_v23 }
  0xf2   : > { %391 = vadd.xlane.f32.xlu1 %v390_v24 }
 0x175   : > { %v381_v25 = vpop.xlane.xlu0 %380 }
 0x176   : > { %v393_v26 = vmul.f32 0.03125, %v381_v25 }
 0x177   : > { %v389_v27 = vpop.xlane.xlu1 %388 }
 0x178   : > { %v397_v28 = vmul.f32 %v393_v26, %v393_v26  ;;  %v395_v29 = vmul.f32 0.03125, %v389_v27 }
 0x179   : > { %v384_v30 = vpop.xlane.xlu0 %383 }
 0x17a   : > { %v399_v31 = vsub.f32 %v395_v29, %v397_v28  ;;  %v394_v32 = vmul.f32 0.03125, %v384_v30 }
 0x17b   : > { %v392_v33 = vpop.xlane.xlu1 %391 }
 0x17c   : > { %v401_v34 = vmax.f32 %v399_v31, 0.0  ;;  %v398_v35 = vmul.f32 %v394_v32, %v394_v32  ;;  %v396_v36 = vmul.f32 0.03125, %v392_v33 }
 0x17e   : > { %v403_v37 = vadd.f32 1e-12, %v401_v34  ;;  %v400_v38 = vsub.f32 %v396_v36, %v398_v35 }
 0x180   : > { %611 = vrsqrt.f32 %v403_v37  ;;  %v402_v39 = vmax.f32 %v400_v38, 0.0 }
 0x182   : > { %v404_v40 = vadd.f32 1e-12, %v402_v39 }
 0x184   : > { %613 = vrsqrt.f32 %v404_v40 }
 0x18d   : > { %v612_v42 = vpop.eup %611 }
 0x18e   : > { %v414_v43 = vmul.f32 %v612_v42, %v533_v41 }
 0x190   : > { %v417_v45 = vmul.f32 %v414_v43, %v393_v26  ;;  %v427_v49 = vmul.f32 %v414_v43, %v376_v18 }
 0x191   : > { %v614_v46 = vpop.eup %613 }
 0x192   : > { %v415_v47 = vmul.f32 %v614_v46, %v533_v41  ;;  %v425_v48 = vsub.f32 %v534_v44, %v417_v45 }
 0x194   : > { %v418_v50 = vmul.f32 %v415_v47, %v394_v32  ;;  %v429_v51 = vadd.f32 %v427_v49, %v425_v48  ;;  %v428_v53 = vmul.f32 %v415_v47, %v377_v17 }
 0x196   : > { %v426_v52 = vsub.f32 %v534_v44, %v418_v50  ;;  %431 = vst.msk [vmem:[%s261_s12] sm:$0xff] %vm378_vm1, %v429_v51 }
 0x198   : > { %v430_v54 = vadd.f32 %v428_v53, %v426_v52 }
 0x19a   : > { %432 = vst.msk [vmem:[%s261_s12 + $0x8] sm:$0xff] %vm378_vm1, %v430_v54 }
 0x19b   : > { %628 = shalt.err (!%p625_p3)
}
 0x19c   : > { %s629_s26 = scalar_lea.hbm %s815_s16, 256  ;;  %s633_s9 = scalar_lea.hbm %s866_s6, 512 }
 0x19d   : > { %p630_p4 = scmp.ne.s32.totalorder %s815_s16, %s629_s26  ;;  %p634_p9 = scmp.lt.s32.totalorder %s815_s16, %s866_s6 }
 0x19e   : > { %p635_p10 = scmp.lt.s32.totalorder %s633_s9, %s629_s26 }
 0x19f   : > { %p631_p7 = pnand %p630_p4, %p753_p5 }
 0x1a0   : > { %p636_p11 = por %p635_p10, %p634_p9 }
 0x1a1   : > { %p632_p8 = pneg %p631_p7 }
 0x1a3   : > { %p637_p12 = pnand %p636_p11, %p632_p8 }
 0x1a5   : > { %640 = shalt.err (!%p637_p12)
}
 0x1a6   : > { %s678_s12 = smov 128   ;;  %s679_s14 = smov 8  }
 0x1a7   : > { %570 = dma.vmem_to_hbm [thread:$0]  (%p753_p5), %s817_s13, 256, %s815_s16, %s820_s25, %s678_s12, %s678_s12, %s679_s14  }
 0x1a8 PF: > { %p576_p13 = scmp.ge.s32.totalorder %s675_s24, 2  ;;  %s462_s15 = sand.u32 1, %s663_s21  }
 0x1a9   : > { %s463_s17 = scalar_lea.sflag [#allocation3], %s462_s15 }
 0x1aa   : > { %p573_p0 = pnand %p576_p13, %p757_p6 }
 0x1ac   : > { %p574_p1 = pneg %p573_p0 }
 0x1ae   : > { %658 = dma.done.wait (%p574_p1), %s463_s17, 256  }
 0x1af   : > { %660 = vsyncadd (%p574_p1), %s463_s17, 4294967040  ;;  %p16_p2 = scmp.ge.s32.totalorder %s740_s27, 4   ;;  %s869_s21 = smov %s667_s22 }
 0x1b0   : > { %s870_s22 = smov %s671_s23  ;;  %s871_s23 = smov %s751_s30 }
 0x1b1   : > { %s872_s24 = smov %s740_s27  ;;  %18 = sbr.rel (!%p16_p2) target bundleno = 3 (0x3), region = 82 }
 0x1b6   :  { %468 = vsyncpa [#allocation3], 1 }
 0x1b7   :  { %470 = vsyncpa [#allocation3 + $0x1], 1 }

// kernel: tpu_custom_call.1
= control target key start
LH: loop header
LB: loop body
LE: loop exit
PB: predicated region body
PF: predicated region fallthrough
CT: control target
= control target key end

     0   :  { %11 = vsyncpa [#allocation3], 0  ;;  %s860_s0 = inlined_call_operand.vmem [shape: f32[32,64], index: 0, kind: input, shape index: {}]   ;;  %s861_s1 = inlined_call_operand.vmem [shape: f32[32,32], index: 1, kind: input, shape index: {}]   ;;  %s862_s2 = inlined_call_operand.vmem [shape: f32[64,32], index: 2, kind: input, shape index: {}]   ;;  %s863_s3 = inlined_call_operand.vmem [shape: f32[1,32], index: 3, kind: input, shape index: {}]   ;;  %s864_s4 = inlined_call_operand.vmem [shape: f32[1,32], index: 4, kind: input, shape index: {}]   ;;  %s865_s5 = inlined_call_operand.vmem [shape: f32[1,32], index: 5, kind: input, shape index: {}]   ;;  %s866_s6 = inlined_call_operand.hbm [shape: f32[32,32], index: 6, kind: output, shape index: {}]  }
   0x1   :  { %13 = vsyncpa [#allocation3 + $0x1], 0  ;;  %s715_s21 = smov 0   ;;  %s717_s22 = smov 0  }
   0x2   :  { %s719_s23 = smov 0   ;;  %s721_s24 = smov 0  }
   0x3 LB: > { %s736_s25 = sadd.s32 4294967295, %s675_s24   ;;  %s521_s26 = sadd.s32 4294967294, %s675_s24   ;;  %s675_s24 = sphi %s721_s24, %s872_s24   ;;  %s671_s23 = sphi %s719_s23, %s871_s23   ;;  %s667_s22 = sphi %s717_s22, %s870_s22   ;;  %s663_s21 = sphi %s715_s21, %s869_s21  }
   0x4   : > { %s740_s27 = sadd.s32 1, %s675_s24   ;;  %s162_s28 = sadd.s32 1, %s671_s23 }
   0x5   : > { %s159_s29 = ssub.s32 %s675_s24, %s740_s27  ;;  %p172_p0 = scmp.ne.s32.totalorder %s671_s23, %s667_s22 }
   0x6   : > { %p160_p1 = scmp.eq.s32.totalorder %s159_s29, 0  ;;  %p173_p2 = scmp.eq.s32.totalorder %s736_s25, 1 }
   0x7   : > { %p178_p3 = scmp.ne.s32.totalorder %s667_s22, %s663_s21  ;;  %p179_p4 = scmp.eq.s32.totalorder %s521_s26, 1 }
   0x8   : > { %s751_s30 = scalar_select %p160_p1, %s671_s23, %s162_s28  }
   0x9   : > { %p753_p5 = por %p173_p2, %p172_p0  ;;  %p757_p6 = por %p179_p4, %p178_p3 }
   0xa   : > { %p524_p7 = scmp.ge.s32.totalorder %s675_s24, 1  ;;  %p227_p8 = scmp.lt.s32.totalorder %s675_s24, 3 }
   0xc   : > { %p228_p9 = pnand %p524_p7, %p227_p8 }
   0xd   : > { %s526_s13 = sshll.u32 (!%p228_p9), %s736_s25, 1  ;;  %s259_s28 = sand.u32 (!%p228_p9), 1, %s667_s22  }
   0xe   : > { %231 = sbr.rel (%p228_p9) target bundleno = 424 (0x1a8), region = 44  ;;  %p263_p10 = scmp.lt.s32.totalorder (!%p228_p9), %s526_s13, 3 }
   0xf   : > { %s525_s10 = sshll.u32 (!%p228_p9), %s259_s28, 4  ;;  %s540_s11 = sshll.u32 (!%p228_p9), %s736_s25, 8 }
  0x10   : > { %s261_s12 = scalar_lea.vmem (!%p228_p9), [#allocation2], %s525_s10  ;;  %s815_s16 = scalar_lea.hbm (!%p228_p9), %s866_s6, %s540_s11 }
  0x11   : > { %s820_s25 = scalar_lea.sflag (!%p228_p9), [#allocation3], %s259_s28  ;;  %s677_s19 = smov (!%p228_p9), [#allocation2]  }
  0x13   : > { %v284_v0 = vld [vmem:[%s862_s2 + $0x38] sm:$0xff]  ;;  %v283_v1 = vld [vmem:[%s862_s2 + $0x30] sm:$0xff]  ;;  %v282_v2 = vld [vmem:[%s862_s2 + $0x28] sm:$0xff]  ;;  %s874_s13 = smov (!%p263_p10, %s526_s13), 3  ;;  %vm292_vm0 = vcmask 523264   ;;  %vm378_vm1 = vcmask 261120  }
  0x14   : > { %551 = vmatprep.subr.mxu0 %v284_v0  ;;  %v281_v3 = vld [vmem:[%s862_s2 + $0x20] sm:$0xff]  ;;  %s527_s18 = sshll.u32 %s874_s13, 3  ;;  %v280_v4 = vld [vmem:[%s862_s2 + $0x18] sm:$0xff]  ;;  %v279_v6 = vld [vmem:[%s862_s2 + $0x10] sm:$0xff]  ;;  %s447_s13 = sshll.u32 %s261_s12, 4  ;;  %s817_s13 = int_to_ptr.vmem [resolvable:$true] %s447_s13 }
  0x15   : > { %552 = vmatpush3.msra.mxu0 %v284_v0  ;;  %s266_s29 = scalar_lea.vmem %s860_s0, %s527_s18  ;;  %v278_v7 = vld [vmem:[%s862_s2 + $0x8] sm:$0xff]  ;;  %v277_v8 = vld [vmem:[%s862_s2] sm:$0xff]  ;;  %s272_s20 = scalar_lea.vmem %s861_s1, %s527_s18 }
  0x16   : > { %553 = vmatprep.subr.mxu0 %v283_v1  ;;  %v275_v5 = vld [vmem:[%s266_s29] sm:$0xff]  ;;  %v276_v9 = vld [vmem:[%s266_s29 + $0x8] sm:$0xff]  ;;  %s615_s17 = scalar_lea.vmem %s817_s13, 256 }
  0x17   : > { %554 = vmatpush3.msra.mxu0 %v283_v1  ;;  %567 = vmatprep.mubr.msk.f32.mxu0 %vm292_vm0, %v275_v5  ;;  %v530_v10 = vld [vmem:[%s863_s3] ss:$0 sm:$0xff]  ;;  %v375_v13 = vld [vmem:[%s272_s20 + $0x8] sm:$0xff]  ;;  %p616_p11 = scmp.ne.s32.totalorder %s817_s13, %s615_s17 }
  0x18   : > { %555 = vmatprep.subr.mxu0 %v282_v2  ;;  %v374_v15 = vld [vmem:[%s272_s20] sm:$0xff]  ;;  %s619_s20 = sshll.u32 %s677_s19, 4  ;;  %s620_s20 = int_to_ptr.vmem [resolvable:$false] %s619_s20 }
  0x19   : > { %556 = vmatpush3.msra.mxu0 %v282_v2  ;;  %v533_v41 = vld [vmem:[%s864_s4] ss:$0 sm:$0xff]  ;;  %p617_p12 = pnand %p616_p11, %p753_p5  ;;  %s621_s18 = scalar_lea.vmem %s620_s20, 512 }
  0x1a   : > { %557 = vmatprep.subr.mxu0 %v281_v3  ;;  %v534_v44 = vld [vmem:[%s865_s5] ss:$0 sm:$0xff]  ;;  %p622_p0 = scmp.lt.s32.totalorder %s817_s13, %s620_s20  ;;  %p623_p1 = scmp.lt.s32.totalorder %s621_s18, %s615_s17 }
  0x1b   : > { %558 = vmatpush3.msra.mxu0 %v281_v3  ;;  %p618_p13 = pneg %p617_p12 }
  0x1c   : > { %559 = vmatprep.subr.mxu0 %v280_v4  ;;  %p624_p2 = por %p623_p1, %p622_p0 }
  0x1d   : > { %560 = vmatpush3.msra.mxu0 %v280_v4 }
  0x1e   : > { %561 = vmatprep.subr.mxu0 %v279_v6  ;;  %p625_p3 = pnand %p624_p2, %p618_p13 }
  0x1f   : > { %562 = vmatpush3.msra.mxu0 %v279_v6 }
  0x20   : > { %563 = vmatprep.subr.mxu0 %v278_v7 }
  0x21   : > { %564 = vmatpush3.msra.mxu0 %v278_v7 }
  0x22   : > { %565 = vmatprep.subr.mxu0 %v277_v8 }
  0x23   : > { %566 = vmatpush3.msra.mxu0 %v277_v8 }
  0x24   : > { %568 = vmatmul.mubr.msk.f32.vlgmr.msra.gmra.mxu0 %vm292_vm0, %v276_v9 }
  0xe4   : > { %v569_v11 = vpop.f32.mrf.mxu0 }
  0xe5   : > { %v371_v12 = vadd.f32 %v569_v11, %v530_v10 }
  0xe6   : > { %v365_v14 = vpop.f32.mrf.mxu0 }
  0xe7   : > { %v366_v16 = vadd.f32 %v530_v10, %v365_v14  ;;  %v377_v17 = vadd.f32 %v375_v13, %v371_v12 }
  0xe9   : > { %v376_v18 = vadd.f32 %v374_v15, %v366_v16  ;;  %v386_v22 = vmul.f32 %v377_v17, %v377_v17  ;;  %v382_v23 = vsel %vm378_vm1, %v377_v17, 0.0 }
  0xeb   : > { %v379_v19 = vsel %vm378_vm1, %v376_v18, 0.0  ;;  %v385_v20 = vmul.f32 %v376_v18, %v376_v18  ;;  %v390_v24 = vsel %vm378_vm1, %v386_v22, 0.0 }
  0xec   : > { %380 = vadd.xlane.f32.xlu0 %v379_v19 }
  0xed   : > { %v387_v21 = vsel %vm378_vm1, %v385_v20, 0.0 }
  0xee   : > { %388 = vadd.xlane.f32.xlu1 %v387_v21 }
  0xf0   : > { %383 = vadd.xlane.f32.xlu0 %v382_v23 }
  0xf2   : > { %391 = vadd.xlane.f32.xlu1 %v390_v24 }
 0x175   : > { %v381_v25 = vpop.xlane.xlu0 %380 }
 0x176   : > { %v393_v26 = vmul.f32 0.03125, %v381_v25 }
 0x177   : > { %v389_v27 = vpop.xlane.xlu1 %388 }
 0x178   : > { %v397_v28 = vmul.f32 %v393_v26, %v393_v26  ;;  %v395_v29 = vmul.f32 0.03125, %v389_v27 }
 0x179   : > { %v384_v30 = vpop.xlane.xlu0 %383 }
 0x17a   : > { %v399_v31 = vsub.f32 %v395_v29, %v397_v28  ;;  %v394_v32 = vmul.f32 0.03125, %v384_v30 }
 0x17b   : > { %v392_v33 = vpop.xlane.xlu1 %391 }
 0x17c   : > { %v401_v34 = vmax.f32 %v399_v31, 0.0  ;;  %v398_v35 = vmul.f32 %v394_v32, %v394_v32  ;;  %v396_v36 = vmul.f32 0.03125, %v392_v33 }
 0x17e   : > { %v403_v37 = vadd.f32 1e-12, %v401_v34  ;;  %v400_v38 = vsub.f32 %v396_v36, %v398_v35 }
 0x180   : > { %611 = vrsqrt.f32 %v403_v37  ;;  %v402_v39 = vmax.f32 %v400_v38, 0.0 }
 0x182   : > { %v404_v40 = vadd.f32 1e-12, %v402_v39 }
 0x184   : > { %613 = vrsqrt.f32 %v404_v40 }
 0x18d   : > { %v612_v42 = vpop.eup %611 }
 0x18e   : > { %v414_v43 = vmul.f32 %v612_v42, %v533_v41 }
 0x190   : > { %v417_v45 = vmul.f32 %v414_v43, %v393_v26  ;;  %v427_v49 = vmul.f32 %v414_v43, %v376_v18 }
 0x191   : > { %v614_v46 = vpop.eup %613 }
 0x192   : > { %v415_v47 = vmul.f32 %v614_v46, %v533_v41  ;;  %v425_v48 = vsub.f32 %v534_v44, %v417_v45 }
 0x194   : > { %v418_v50 = vmul.f32 %v415_v47, %v394_v32  ;;  %v429_v51 = vadd.f32 %v427_v49, %v425_v48  ;;  %v428_v53 = vmul.f32 %v415_v47, %v377_v17 }
 0x196   : > { %v426_v52 = vsub.f32 %v534_v44, %v418_v50  ;;  %431 = vst.msk [vmem:[%s261_s12] sm:$0xff] %vm378_vm1, %v429_v51 }
 0x198   : > { %v430_v54 = vadd.f32 %v428_v53, %v426_v52 }
 0x19a   : > { %432 = vst.msk [vmem:[%s261_s12 + $0x8] sm:$0xff] %vm378_vm1, %v430_v54 }
 0x19b   : > { %628 = shalt.err (!%p625_p3)
}
 0x19c   : > { %s629_s26 = scalar_lea.hbm %s815_s16, 256  ;;  %s633_s9 = scalar_lea.hbm %s866_s6, 512 }
 0x19d   : > { %p630_p4 = scmp.ne.s32.totalorder %s815_s16, %s629_s26  ;;  %p634_p9 = scmp.lt.s32.totalorder %s815_s16, %s866_s6 }
 0x19e   : > { %p635_p10 = scmp.lt.s32.totalorder %s633_s9, %s629_s26 }
 0x19f   : > { %p631_p7 = pnand %p630_p4, %p753_p5 }
 0x1a0   : > { %p636_p11 = por %p635_p10, %p634_p9 }
 0x1a1   : > { %p632_p8 = pneg %p631_p7 }
 0x1a3   : > { %p637_p12 = pnand %p636_p11, %p632_p8 }
 0x1a5   : > { %640 = shalt.err (!%p637_p12)
}
 0x1a6   : > { %s678_s12 = smov 128   ;;  %s679_s14 = smov 8  }
 0x1a7   : > { %570 = dma.vmem_to_hbm [thread:$0]  (%p753_p5), %s817_s13, 256, %s815_s16, %s820_s25, %s678_s12, %s678_s12, %s679_s14  }
 0x1a8 PF: > { %p576_p13 = scmp.ge.s32.totalorder %s675_s24, 2  ;;  %s462_s15 = sand.u32 1, %s663_s21  }
 0x1a9   : > { %s463_s17 = scalar_lea.sflag [#allocation3], %s462_s15 }
 0x1aa   : > { %p573_p0 = pnand %p576_p13, %p757_p6 }
 0x1ac   : > { %p574_p1 = pneg %p573_p0 }
 0x1ae   : > { %658 = dma.done.wait (%p574_p1), %s463_s17, 256  }
 0x1af   : > { %660 = vsyncadd (%p574_p1), %s463_s17, 4294967040  ;;  %p16_p2 = scmp.ge.s32.totalorder %s740_s27, 4   ;;  %s869_s21 = smov %s667_s22 }
 0x1b0   : > { %s870_s22 = smov %s671_s23  ;;  %s871_s23 = smov %s751_s30 }
 0x1b1   : > { %s872_s24 = smov %s740_s27  ;;  %18 = sbr.rel (!%p16_p2) target bundleno = 3 (0x3), region = 82 }
 0x1b6   :  { %468 = vsyncpa [#allocation3], 1 }
 0x1b7   :  { %470 = vsyncpa [#allocation3 + $0x1], 1 }

</bundles_post_ra>
